<compile_context>
chip_gen: v7x
topology: tpu7x:2x2x1
jax: 0.10.0
libtpu: 0.0.40
codegen_flags: <defaults>
</compile_context>

<pallas_src>
import functools

import jax
import jax.numpy as jnp
from jax import lax
from jax.experimental import pallas as pl
from jax.experimental.pallas import tpu as pltpu


def _round_up(x, m):
    return (x + m - 1) // m * m


def _vmem_capacity_bytes():
    """Physical VMEM per TensorCore (fallback: smallest generation, v7x)."""
    try:
        return int(pltpu.get_tpu_info().vmem_capacity_bytes)
    except Exception:
        return 64 * 1024 * 1024


def _supcon_kernel(contrast_ref, rid_ref, cid_ref, pcnt_ref, scale_ref, out_ref,
                   *, tm, inv_temp, has_col_padding):
    """One anchor-row tile: loss_i = scale_i * (sum_pos(logits_i) - pcnt_i*log(denom_i))."""
    i = pl.program_id(0)
    row0 = pl.multiple_of(i * tm, tm)

    contrast = contrast_ref[...]                       # (Np, Dp) resident slab (bf16/f32)
    a_rows = contrast_ref[pl.ds(row0, tm), :]          # (TM, Dp) sliced view of the slab
    rid = rid_ref[...]                                 # (TM, 1)  int32 class ids
    cid = cid_ref[...]                                 # (1, Np)  int32 class ids
    pcnt = pcnt_ref[...]                               # (TM, 1)  f32: positives excl. self
    scale = scale_ref[...]                             # (TM, 1)  f32: -(T/bT)/max(pcnt,1)

    # anchor . contrast^T on the MXU (contract last dims of both operands --
    # the flash-attention pattern; the transposed operand latch happens inside
    # the MXU, no per-step XLU transpose of the resident slab), f32 accumulate.
    adc = lax.dot_general(
        a_rows, contrast,
        dimension_numbers=(((1,), (1,)), ((), ())),
        preferred_element_type=jnp.float32) * inv_temp            # (TM, Np)

    # Numerical stabilization (the final loss is shift-invariant; the diagonal
    # is always present so the shift matches the reference exactly).
    m = jnp.max(adc, axis=1, keepdims=True)                       # (TM, 1)
    logits = adc - m                                              # (TM, Np)

    # Mask the diagonal (self-comparison) directly via global indices -- this
    # is what the reference's logits_mask does, and it avoids the
    # sum-minus-exp(diag) cancellation edge case.
    n_cols = logits.shape[1]
    col_idx = lax.broadcasted_iota(jnp.int32, (tm, n_cols), 1)
    row_idx = row0 + lax.broadcasted_iota(jnp.int32, (tm, 1), 0)
    not_diag = col_idx != row_idx                                 # (TM, Np) bool

    valid = not_diag
    if has_col_padding:
        valid = jnp.logical_and(valid, cid >= 0)                  # drop padded columns
    denom = jnp.sum(jnp.where(valid, jnp.exp(logits), 0.0),
                    axis=1, keepdims=True)                        # (TM, 1)
    log_denom = jnp.log(denom)

    # Fused masked positive-logit reduction (no f32 mask materialized; padded
    # ids == -1 never match real ids >= 0).
    pos = jnp.logical_and(rid == cid, not_diag)                   # (TM, Np) bool
    sum_pos = jnp.sum(jnp.where(pos, logits, 0.0),
                      axis=1, keepdims=True)                      # (TM, 1)

    out_ref[...] = (scale * (sum_pos - pcnt * log_denom)).astype(jnp.float32)


def supcon_loss_pallas(features, labels=None, mask=None,
                       temperature=0.07, contrast_mode='all',
                       base_temperature=0.07,
                       compute_dtype=jnp.bfloat16, block_rows=None):
    """Pallas-backed SupConLoss forward. features: [bsz, n_views, ...]."""
    if features.ndim < 3:
        raise ValueError('`features` needs to be [bsz, n_views, ...]')
    if features.ndim > 3:
        features = features.reshape(features.shape[0], features.shape[1], -1)
    if contrast_mode != 'all':
        # TODO(synk): contrast_mode='one' (anchor = view 0 only) not wired up.
        raise ValueError("only contrast_mode='all' implemented")
    if labels is not None and mask is not None:
        raise ValueError('Cannot define both `labels` and `mask`')
    if mask is not None:
        # TODO(synk): arbitrary (possibly asymmetric) [bsz, bsz] mask is not
        # expressible as a class-id vector; not supported in the Pallas path.
        raise NotImplementedError('explicit `mask` not supported in Pallas path')

    bsz, n_views, dim = features.shape
    n = n_views * bsz

    # Class ids per sample (real ids >= 0; padding uses -1).
    if labels is None:
        ids_base = jnp.arange(bsz, dtype=jnp.int32)              # SimCLR: eye(bsz)
    else:
        labels = jnp.asarray(labels).reshape(-1).astype(jnp.int32)
        if labels.shape[0] != bsz:
            raise ValueError('Num of labels does not match num of features')
        ids_base = labels - jnp.min(labels)
    ids = jnp.tile(ids_base, n_views)                            # view-major, [N]

    # contrast_feature = torch.cat(torch.unbind(features, dim=1), dim=0)
    cf = jnp.transpose(features, (1, 0, 2)).reshape(n, dim).astype(compute_dtype)

    # Per-anchor scalars, hoisted out of the kernel (O(N log N), no NxN temp).
    ids_sorted = jnp.sort(ids)
    pcnt = (jnp.searchsorted(ids_sorted, ids, side='right')
            - jnp.searchsorted(ids_sorted, ids, side='left') - 1).astype(jnp.float32)
    mpp = jnp.where(pcnt < 1e-6, 1.0, pcnt)                      # torch.where clamp
    loss_scale = -(float(temperature) / float(base_temperature))
    scale = loss_scale / mpp                                     # exact divide, once

    # Generation-aware tiling / VMEM budget.
    vmem_cap = _vmem_capacity_bytes()
    vmem_limit = int(vmem_cap * 3 // 4)                          # ~96 MiB v5e/v6e, ~48 MiB v7x
    if block_rows is None:
        if vmem_cap >= 100 * 1024 * 1024:                        # v5e / v6e (128 MiB VMEM)
            block_rows = 256
        else:                                                    # v7x (64 MiB per TC)
            block_rows = 256 if n <= 2048 else 128

    d_pad = _round_up(dim, 128)
    n8 = _round_up(n, 8)
    itemsize = jnp.dtype(compute_dtype).itemsize

    if n8 <= block_rows:
        # Small batch: still emit >= 2 grid steps so both v7x TCs get work.
        tm = max(8, _round_up(pl.cdiv(n8, 2), 8))
    else:
        tm = block_rows

    def _vmem_estimate(tm_):
        n_pad_ = _round_up(n, tm_)
        slab = n_pad_ * d_pad * itemsize                         # single-buffered slab
        inter = 6 * tm_ * n_pad_ * 4                             # (TM, Np) f32 temporaries
        small = 8 * n_pad_ * 4 + 16 * tm_ * 4                    # ids / per-row scalars / out
        return slab + inter + small

    while tm > 128 and _vmem_estimate(tm) > vmem_limit:
        tm = max(128, tm // 2)
    # TODO(synk): if _vmem_estimate(128) still exceeds the budget, switch to
    # flash-style column tiling instead of keeping the full slab resident.

    n_pad = _round_up(n, tm)
    has_col_padding = (n_pad != n)

    cf_p = jnp.zeros((n_pad, d_pad), compute_dtype).at[:n, :dim].set(cf)
    ids_p = jnp.full((n_pad,), -1, jnp.int32).at[:n].set(ids)
    row_ids = ids_p.reshape(n_pad, 1)
    col_ids = ids_p.reshape(1, n_pad)
    pcnt_p = jnp.zeros((n_pad, 1), jnp.float32).at[:n, 0].set(pcnt)
    scale_p = jnp.zeros((n_pad, 1), jnp.float32).at[:n, 0].set(scale)

    kernel = functools.partial(
        _supcon_kernel, tm=tm, inv_temp=1.0 / float(temperature),
        has_col_padding=has_col_padding)

    def build(single_buffer_resident):
        resident_kw = ({'pipeline_mode': pl.Buffered(1)}
                       if single_buffer_resident else {})
        grid_spec = pltpu.PrefetchScalarGridSpec(
            num_scalar_prefetch=0,
            grid=(n_pad // tm,),
            in_specs=[
                # Resident contrast slab (constant index map -> fetched once).
                pl.BlockSpec((n_pad, d_pad), lambda i: (0, 0), **resident_kw),
                pl.BlockSpec((tm, 1), lambda i: (i, 0)),         # row class ids
                pl.BlockSpec((1, n_pad), lambda i: (0, 0), **resident_kw),  # col ids
                pl.BlockSpec((tm, 1), lambda i: (i, 0)),         # positive counts
                pl.BlockSpec((tm, 1), lambda i: (i, 0)),         # per-row loss scale
            ],
            out_specs=pl.BlockSpec((tm, 1), lambda i: (i, 0)),
        )
        return pl.pallas_call(
            kernel,
            out_shape=jax.ShapeDtypeStruct((n_pad, 1), jnp.float32),
            grid_spec=grid_spec,
            compiler_params=pltpu.CompilerParams(
                dimension_semantics=("parallel",),
                vmem_limit_bytes=vmem_limit),
        )

    args = (cf_p, row_ids, col_ids, pcnt_p, scale_p)
    try:
        per_anchor = build(True)(*args)      # resident inputs single-buffered
    except Exception:
        # Fallback for Pallas builds that reject pipeline_mode=pl.Buffered(1).
        per_anchor = build(False)(*args)

    # Final mean over the N real anchors (== loss.view(anchor_count, bsz).mean()).
    return jnp.sum(per_anchor[:n, 0]) / jnp.float32(n)


def supcon_loss_ref(features, labels=None, temperature=0.07, base_temperature=0.07):
    """Pure-JAX f32 reference mirroring the PyTorch module (contrast_mode='all')."""
    bsz, n_views, dim = features.shape
    if labels is None:
        base_mask = jnp.eye(bsz, dtype=jnp.float32)
    else:
        labels = jnp.asarray(labels).reshape(-1, 1)
        base_mask = (labels == labels.T).astype(jnp.float32)
    cf = jnp.transpose(features, (1, 0, 2)).reshape(n_views * bsz, dim).astype(jnp.float32)
    n = n_views * bsz
    adc = (cf @ cf.T) / temperature
    logits = adc - jnp.max(adc, axis=1, keepdims=True)
    full_mask = jnp.tile(base_mask, (n_views, n_views))
    logits_mask = 1.0 - jnp.eye(n, dtype=jnp.float32)
    full_mask = full_mask * logits_mask
    exp_logits = jnp.exp(logits) * logits_mask
    log_prob = logits - jnp.log(jnp.sum(exp_logits, axis=1, keepdims=True))
    mpp = jnp.sum(full_mask, axis=1)
    mpp = jnp.where(mpp < 1e-6, 1.0, mpp)
    mean_lpp = jnp.sum(full_mask * log_prob, axis=1) / mpp
    loss = -(temperature / base_temperature) * mean_lpp
    return jnp.mean(loss)


if __name__ == "__main__":
    key = jax.random.PRNGKey(0)
    k_feat, k_lab, k_feat2, k_lab2 = jax.random.split(key, 4)

    # --- Case 1: bsz=8, n_views=2, dim=32 (supervised + SimCLR) ---
    bsz, n_views, dim = 8, 2, 32
    feats = jax.random.normal(k_feat, (bsz, n_views, dim), dtype=jnp.float32)
    feats = feats / jnp.linalg.norm(feats, axis=-1, keepdims=True)
    labels = jax.random.randint(k_lab, (bsz,), 0, 3)

    loss_sup_bf16 = jax.block_until_ready(supcon_loss_pallas(feats, labels=labels))
    loss_sup_f32 = jax.block_until_ready(
        supcon_loss_pallas(feats, labels=labels, compute_dtype=jnp.float32))
    ref_sup = supcon_loss_ref(feats, labels=labels)

    loss_unsup_bf16 = jax.block_until_ready(supcon_loss_pallas(feats))
    loss_unsup_f32 = jax.block_until_ready(
        supcon_loss_pallas(feats, compute_dtype=jnp.float32))
    ref_unsup = supcon_loss_ref(feats)

    # f32 matmul path: tight tolerance; bf16 (MXU-native default): loosened.
    assert jnp.allclose(loss_sup_f32, ref_sup, rtol=5e-3, atol=5e-3), (loss_sup_f32, ref_sup)
    assert jnp.allclose(loss_unsup_f32, ref_unsup, rtol=5e-3, atol=5e-3), (loss_unsup_f32, ref_unsup)
    assert jnp.allclose(loss_sup_bf16, ref_sup, rtol=5e-2, atol=5e-2), (loss_sup_bf16, ref_sup)
    assert jnp.allclose(loss_unsup_bf16, ref_unsup, rtol=5e-2, atol=5e-2), (loss_unsup_bf16, ref_unsup)

    # --- Case 2: ragged shapes exercising row/col padding (f32 matmul path) ---
    bsz2, n_views2, dim2 = 10, 2, 40
    feats2 = jax.random.normal(k_feat2, (bsz2, n_views2, dim2), dtype=jnp.float32)
    feats2 = feats2 / jnp.linalg.norm(feats2, axis=-1, keepdims=True)
    labels2 = jax.random.randint(k_lab2, (bsz2,), 0, 4)
    loss2 = jax.block_until_ready(
        supcon_loss_pallas(feats2, labels=labels2, compute_dtype=jnp.float32))
    ref2 = supcon_loss_ref(feats2, labels=labels2)
    assert jnp.allclose(loss2, ref2, rtol=5e-3, atol=5e-3), (loss2, ref2)

    print("KERNEL_OK")
</pallas_src>

<mosaic_0001>
module attributes {stable_mosaic.version = 11 : i64} {
  func.func @_supcon_kernel(%arg0: i32, %arg1: memref<16x128xbf16, #tpu.memory_space<vmem>>, %arg2: memref<8x1xi32, #tpu.memory_space<vmem>>, %arg3: memref<1x16xi32, #tpu.memory_space<vmem>>, %arg4: memref<8x1xf32, #tpu.memory_space<vmem>>, %arg5: memref<8x1xf32, #tpu.memory_space<vmem>>, %arg6: memref<8x1xf32, #tpu.memory_space<vmem>>) attributes {dimension_semantics = [#tpu.dimension_semantics<parallel>], iteration_bounds = array<i64: 2>, scalar_prefetch = 0 : i64, scratch_operands = 0 : i64, tpu.core_type = #tpu.core_type<tc>, window_params = [{pipeline_mode = #tpu.pipeline_mode<synchronous>, transform_indices = @transform_0, window_bounds = array<i64: 16, 128>}, {transform_indices = @transform_1, window_bounds = array<i64: 8, 1>}, {pipeline_mode = #tpu.pipeline_mode<synchronous>, transform_indices = @transform_2, window_bounds = array<i64: 1, 16>}, {transform_indices = @transform_3, window_bounds = array<i64: 8, 1>}, {transform_indices = @transform_4, window_bounds = array<i64: 8, 1>}, {transform_indices = @transform_5, window_bounds = array<i64: 8, 1>}]} {
    %c8_i32 = arith.constant 8 : i32
    %0 = arith.muli %arg0, %c8_i32 : i32
    %1 = tpu.assume_multiple %0, 8 : i32
    %c0 = arith.constant 0 : index
    %c0_0 = arith.constant 0 : index
    %2 = vector.load %arg1[%c0, %c0_0] : memref<16x128xbf16, #tpu.memory_space<vmem>>, vector<16x128xbf16>
    %3 = arith.index_cast %1 : i32 to index
    %c0_1 = arith.constant 0 : index
    %4 = vector.load %arg1[%3, %c0_1] : memref<16x128xbf16, #tpu.memory_space<vmem>>, vector<8x128xbf16>
    %c0_2 = arith.constant 0 : index
    %c0_3 = arith.constant 0 : index
    %5 = vector.load %arg2[%c0_2, %c0_3] : memref<8x1xi32, #tpu.memory_space<vmem>>, vector<8x1xi32>
    %c0_4 = arith.constant 0 : index
    %c0_5 = arith.constant 0 : index
    %6 = vector.load %arg3[%c0_4, %c0_5] : memref<1x16xi32, #tpu.memory_space<vmem>>, vector<1x16xi32>
    %c0_6 = arith.constant 0 : index
    %c0_7 = arith.constant 0 : index
    %7 = vector.load %arg4[%c0_6, %c0_7] : memref<8x1xf32, #tpu.memory_space<vmem>>, vector<8x1xf32>
    %c0_8 = arith.constant 0 : index
    %c0_9 = arith.constant 0 : index
    %8 = vector.load %arg5[%c0_8, %c0_9] : memref<8x1xf32, #tpu.memory_space<vmem>>, vector<8x1xf32>
    %cst = arith.constant dense<0.000000e+00> : vector<8x16xf32>
    %9 = tpu.matmul %4, %2, %cst {dimension_numbers = #tpu.dot_dimension_numbers<[1], [1], [0], [0], [0, 0, 1, 0], [], []>} : vector<8x128xbf16>, vector<16x128xbf16>, vector<8x16xf32> -> vector<8x16xf32>
    %cst_10 = arith.constant 14.2857141 : f32
    %10 = vector.broadcast %cst_10 : f32 to vector<8x16xf32>
    %11 = arith.mulf %9, %10 : vector<8x16xf32>
    %cst_11 = arith.constant dense<0xFF800000> : vector<8xf32>
    %12 = vector.multi_reduction <maximumf>, %11, %cst_11 [1] : vector<8x16xf32> to vector<8xf32>
    %13 = vector.shape_cast %12 : vector<8xf32> to vector<8x1xf32>
    %14 = vector.broadcast %13 : vector<8x1xf32> to vector<8x16xf32>
    %15 = arith.subf %11, %14 : vector<8x16xf32>
    %16 = tpu.iota {dimensions = array<i32: 1>} : vector<8x16xi32>
    %17 = tpu.iota {dimensions = array<i32: 0>} : vector<8x1xi32>
    %18 = vector.broadcast %1 : i32 to vector<8x1xi32>
    %19 = arith.addi %18, %17 : vector<8x1xi32>
    %20 = vector.broadcast %19 : vector<8x1xi32> to vector<8x16xi32>
    %21 = arith.cmpi ne, %16, %20 : vector<8x16xi32>
    %22 = math.exp %15 : vector<8x16xf32>
    %cst_12 = arith.constant 0.000000e+00 : f32
    %23 = vector.broadcast %cst_12 : f32 to vector<8x16xf32>
    %24 = arith.select %21, %22, %23 : vector<8x16xi1>, vector<8x16xf32>
    %cst_13 = arith.constant dense<0.000000e+00> : vector<8xf32>
    %25 = vector.multi_reduction <add>, %24, %cst_13 [1] : vector<8x16xf32> to vector<8xf32>
    %26 = vector.shape_cast %25 : vector<8xf32> to vector<8x1xf32>
    %27 = math.log %26 : vector<8x1xf32>
    %28 = vector.broadcast %5 : vector<8x1xi32> to vector<8x16xi32>
    %29 = vector.broadcast %6 : vector<1x16xi32> to vector<8x16xi32>
    %30 = arith.cmpi eq, %28, %29 : vector<8x16xi32>
    %31 = arith.andi %30, %21 : vector<8x16xi1>
    %cst_14 = arith.constant 0.000000e+00 : f32
    %32 = vector.broadcast %cst_14 : f32 to vector<8x16xf32>
    %33 = arith.select %31, %15, %32 : vector<8x16xi1>, vector<8x16xf32>
    %cst_15 = arith.constant dense<0.000000e+00> : vector<8xf32>
    %34 = vector.multi_reduction <add>, %33, %cst_15 [1] : vector<8x16xf32> to vector<8xf32>
    %35 = vector.shape_cast %34 : vector<8xf32> to vector<8x1xf32>
    %36 = arith.mulf %7, %27 : vector<8x1xf32>
    %37 = arith.subf %35, %36 : vector<8x1xf32>
    %38 = arith.mulf %8, %37 : vector<8x1xf32>
    %c0_16 = arith.constant 0 : index
    %c0_17 = arith.constant 0 : index
    %39 = vector.load %arg6[%c0_16, %c0_17] : memref<8x1xf32, #tpu.memory_space<vmem>>, vector<8x1xf32>
    tpu.vector_store %arg6[%c0_16, %c0_17], %38 {strides = array<i32>} : memref<8x1xf32, #tpu.memory_space<vmem>>, vector<8x1xf32>,
    return
  }
  func.func @transform_0(%arg0: i32) -> (i32, i32) {
    %c0_i32 = arith.constant 0 : i32
    %c0_i32_0 = arith.constant 0 : i32
    %c0_i32_1 = arith.constant 0 : i32
    return %c0_i32, %c0_i32_0 : i32, i32
  }
  func.func @transform_1(%arg0: i32) -> (i32, i32) {
    %c0_i32 = arith.constant 0 : i32
    %c0_i32_0 = arith.constant 0 : i32
    return %arg0, %c0_i32 : i32, i32
  }
  func.func @transform_2(%arg0: i32) -> (i32, i32) {
    %c0_i32 = arith.constant 0 : i32
    %c0_i32_0 = arith.constant 0 : i32
    %c0_i32_1 = arith.constant 0 : i32
    return %c0_i32, %c0_i32_0 : i32, i32
  }
  func.func @transform_3(%arg0: i32) -> (i32, i32) {
    %c0_i32 = arith.constant 0 : i32
    %c0_i32_0 = arith.constant 0 : i32
    return %arg0, %c0_i32 : i32, i32
  }
  func.func @transform_4(%arg0: i32) -> (i32, i32) {
    %c0_i32 = arith.constant 0 : i32
    %c0_i32_0 = arith.constant 0 : i32
    return %arg0, %c0_i32 : i32, i32
  }
  func.func @transform_5(%arg0: i32) -> (i32, i32) {
    %c0_i32 = arith.constant 0 : i32
    %c0_i32_0 = arith.constant 0 : i32
    return %arg0, %c0_i32 : i32, i32
  }
}

module attributes {stable_mosaic.version = 11 : i64} {
  func.func @_supcon_kernel(%arg0: i32, %arg1: memref<16x128xbf16, #tpu.memory_space<vmem>>, %arg2: memref<8x1xi32, #tpu.memory_space<vmem>>, %arg3: memref<1x16xi32, #tpu.memory_space<vmem>>, %arg4: memref<8x1xf32, #tpu.memory_space<vmem>>, %arg5: memref<8x1xf32, #tpu.memory_space<vmem>>, %arg6: memref<8x1xf32, #tpu.memory_space<vmem>>) attributes {dimension_semantics = [#tpu.dimension_semantics<parallel>], iteration_bounds = array<i64: 2>, scalar_prefetch = 0 : i64, scratch_operands = 0 : i64, tpu.core_type = #tpu.core_type<tc>, window_params = [{pipeline_mode = #tpu.pipeline_mode<synchronous>, transform_indices = @transform_0, window_bounds = array<i64: 16, 128>}, {transform_indices = @transform_1, window_bounds = array<i64: 8, 1>}, {pipeline_mode = #tpu.pipeline_mode<synchronous>, transform_indices = @transform_2, window_bounds = array<i64: 1, 16>}, {transform_indices = @transform_3, window_bounds = array<i64: 8, 1>}, {transform_indices = @transform_4, window_bounds = array<i64: 8, 1>}, {transform_indices = @transform_5, window_bounds = array<i64: 8, 1>}]} {
    %c8_i32 = arith.constant 8 : i32
    %0 = arith.muli %arg0, %c8_i32 : i32
    %1 = tpu.assume_multiple %0, 8 : i32
    %c0 = arith.constant 0 : index
    %c0_0 = arith.constant 0 : index
    %2 = vector.load %arg1[%c0, %c0_0] : memref<16x128xbf16, #tpu.memory_space<vmem>>, vector<16x128xbf16>
    %3 = arith.index_cast %1 : i32 to index
    %c0_1 = arith.constant 0 : index
    %4 = vector.load %arg1[%3, %c0_1] : memref<16x128xbf16, #tpu.memory_space<vmem>>, vector<8x128xbf16>
    %c0_2 = arith.constant 0 : index
    %c0_3 = arith.constant 0 : index
    %5 = vector.load %arg2[%c0_2, %c0_3] : memref<8x1xi32, #tpu.memory_space<vmem>>, vector<8x1xi32>
    %c0_4 = arith.constant 0 : index
    %c0_5 = arith.constant 0 : index
    %6 = vector.load %arg3[%c0_4, %c0_5] : memref<1x16xi32, #tpu.memory_space<vmem>>, vector<1x16xi32>
    %c0_6 = arith.constant 0 : index
    %c0_7 = arith.constant 0 : index
    %7 = vector.load %arg4[%c0_6, %c0_7] : memref<8x1xf32, #tpu.memory_space<vmem>>, vector<8x1xf32>
    %c0_8 = arith.constant 0 : index
    %c0_9 = arith.constant 0 : index
    %8 = vector.load %arg5[%c0_8, %c0_9] : memref<8x1xf32, #tpu.memory_space<vmem>>, vector<8x1xf32>
    %cst = arith.constant dense<0.000000e+00> : vector<8x16xf32>
    %9 = tpu.matmul %4, %2, %cst {dimension_numbers = #tpu.dot_dimension_numbers<[1], [1], [0], [0], [0, 0, 1, 0], [], []>} : vector<8x128xbf16>, vector<16x128xbf16>, vector<8x16xf32> -> vector<8x16xf32>
    %cst_10 = arith.constant 14.2857141 : f32
    %10 = vector.broadcast %cst_10 : f32 to vector<8x16xf32>
    %11 = arith.mulf %9, %10 : vector<8x16xf32>
    %cst_11 = arith.constant dense<0xFF800000> : vector<8xf32>
    %12 = vector.multi_reduction <maximumf>, %11, %cst_11 [1] : vector<8x16xf32> to vector<8xf32>
    %13 = vector.shape_cast %12 : vector<8xf32> to vector<8x1xf32>
    %14 = vector.broadcast %13 : vector<8x1xf32> to vector<8x16xf32>
    %15 = arith.subf %11, %14 : vector<8x16xf32>
    %16 = tpu.iota {dimensions = array<i32: 1>} : vector<8x16xi32>
    %17 = tpu.iota {dimensions = array<i32: 0>} : vector<8x1xi32>
    %18 = vector.broadcast %1 : i32 to vector<8x1xi32>
    %19 = arith.addi %18, %17 : vector<8x1xi32>
    %20 = vector.broadcast %19 : vector<8x1xi32> to vector<8x16xi32>
    %21 = arith.cmpi ne, %16, %20 : vector<8x16xi32>
    %22 = math.exp %15 : vector<8x16xf32>
    %cst_12 = arith.constant 0.000000e+00 : f32
    %23 = vector.broadcast %cst_12 : f32 to vector<8x16xf32>
    %24 = arith.select %21, %22, %23 : vector<8x16xi1>, vector<8x16xf32>
    %cst_13 = arith.constant dense<0.000000e+00> : vector<8xf32>
    %25 = vector.multi_reduction <add>, %24, %cst_13 [1] : vector<8x16xf32> to vector<8xf32>
    %26 = vector.shape_cast %25 : vector<8xf32> to vector<8x1xf32>
    %27 = math.log %26 : vector<8x1xf32>
    %28 = vector.broadcast %5 : vector<8x1xi32> to vector<8x16xi32>
    %29 = vector.broadcast %6 : vector<1x16xi32> to vector<8x16xi32>
    %30 = arith.cmpi eq, %28, %29 : vector<8x16xi32>
    %31 = arith.andi %30, %21 : vector<8x16xi1>
    %cst_14 = arith.constant 0.000000e+00 : f32
    %32 = vector.broadcast %cst_14 : f32 to vector<8x16xf32>
    %33 = arith.select %31, %15, %32 : vector<8x16xi1>, vector<8x16xf32>
    %cst_15 = arith.constant dense<0.000000e+00> : vector<8xf32>
    %34 = vector.multi_reduction <add>, %33, %cst_15 [1] : vector<8x16xf32> to vector<8xf32>
    %35 = vector.shape_cast %34 : vector<8xf32> to vector<8x1xf32>
    %36 = arith.mulf %7, %27 : vector<8x1xf32>
    %37 = arith.subf %35, %36 : vector<8x1xf32>
    %38 = arith.mulf %8, %37 : vector<8x1xf32>
    %c0_16 = arith.constant 0 : index
    %c0_17 = arith.constant 0 : index
    %39 = vector.load %arg6[%c0_16, %c0_17] : memref<8x1xf32, #tpu.memory_space<vmem>>, vector<8x1xf32>
    tpu.vector_store %arg6[%c0_16, %c0_17], %38 {strides = array<i32>} : memref<8x1xf32, #tpu.memory_space<vmem>>, vector<8x1xf32>,
    return
  }
  func.func @transform_0(%arg0: i32) -> (i32, i32) {
    %c0_i32 = arith.constant 0 : i32
    %c0_i32_0 = arith.constant 0 : i32
    %c0_i32_1 = arith.constant 0 : i32
    return %c0_i32, %c0_i32_0 : i32, i32
  }
  func.func @transform_1(%arg0: i32) -> (i32, i32) {
    %c0_i32 = arith.constant 0 : i32
    %c0_i32_0 = arith.constant 0 : i32
    return %arg0, %c0_i32 : i32, i32
  }
  func.func @transform_2(%arg0: i32) -> (i32, i32) {
    %c0_i32 = arith.constant 0 : i32
    %c0_i32_0 = arith.constant 0 : i32
    %c0_i32_1 = arith.constant 0 : i32
    return %c0_i32, %c0_i32_0 : i32, i32
  }
  func.func @transform_3(%arg0: i32) -> (i32, i32) {
    %c0_i32 = arith.constant 0 : i32
    %c0_i32_0 = arith.constant 0 : i32
    return %arg0, %c0_i32 : i32, i32
  }
  func.func @transform_4(%arg0: i32) -> (i32, i32) {
    %c0_i32 = arith.constant 0 : i32
    %c0_i32_0 = arith.constant 0 : i32
    return %arg0, %c0_i32 : i32, i32
  }
  func.func @transform_5(%arg0: i32) -> (i32, i32) {
    %c0_i32 = arith.constant 0 : i32
    %c0_i32_0 = arith.constant 0 : i32
    return %arg0, %c0_i32 : i32, i32
  }
}

</mosaic_0001>

<bundles_post_ra>
// kernel: tpu_custom_call.1
= control target key start
LH: loop header
LB: loop body
LE: loop exit
PB: predicated region body
PF: predicated region fallthrough
CT: control target
= control target key end

     0   :  { %s512_s18 = smov 0   ;;  %s558_s0 = inlined_call_operand.vmem [shape: bf16[16,128], index: 0, kind: input, shape index: {}]   ;;  %s559_s1 = inlined_call_operand.vmem [shape: s32[16,1], index: 1, kind: input, shape index: {}]   ;;  %s560_s2 = inlined_call_operand.vmem [shape: s32[1,16], index: 2, kind: input, shape index: {}]   ;;  %s561_s3 = inlined_call_operand.vmem [shape: f32[16,1], index: 3, kind: input, shape index: {}]   ;;  %s562_s4 = inlined_call_operand.vmem [shape: f32[16,1], index: 4, kind: input, shape index: {}]   ;;  %s563_s5 = inlined_call_operand.vmem [shape: f32[16,1], index: 5, kind: output, shape index: {}]  }
   0x1 LB: > { %s518_s19 = sadd.s32 4294967295, %s477_s18   ;;  %p435_p0 = scmp.ge.s32.totalorder %s477_s18, 1  ;;  %s477_s18 = sphi %s512_s18, %s15_s18  }
   0x2   : > { %p204_p1 = scmp.lt.s32.totalorder %s477_s18, 3 }
   0x4   : > { %p205_p2 = pnand %p435_p0, %p204_p1 }
   0x5   : > { %v466_v0 = vld [vmem:[%s558_s0] sm:$0xff] (!%p205_p2)   ;;  %v479_v1 = vmov (!%p205_p2), 0.0   ;;  %s440_s22 = sshll.u32 (!%p205_p2), %s518_s19, 3  ;;  %vm480_vm0 = vmmov (!%p205_p2), 0   ;;  %v481_v3 = vmov (!%p205_p2), 0   ;;  %vm314_vm1 = vcmask (!%p205_p2), 130048  }
   0x6   : > { %208 = sbr.rel (%p205_p2) target bundleno = 550 (0x226), region = 40  ;;  %448 = vmatprep.subr.bf16.mxu0 (!%p205_p2), %v479_v1  ;;  %450 = vmatprep.mubr.msk.bf16.mxu0 (!%p205_p2), %vm480_vm0, %v479_v1  ;;  %s258_s23 = sshra.s32 (!%p205_p2), %s440_s22, 3  ;;  %v319_v12 = vlaneseq (!%p205_p2)  ;;  %v323_v16 = vstv (!%p205_p2), %s440_s22  ;;  %v443_v19 = vld [vmem:[%s560_s2] ss:$0 sm:$0xff] (!%p205_p2)  ;;  %vm350_vm5 = vcmask (!%p205_p2), 7168  }
   0x7   : > { %449 = vmatpush3.bf16.xpose.msra.mxu0 (!%p205_p2), %v466_v0  ;;  %s441_s24 = sshll.u32 (!%p205_p2), %s258_s23, 2  ;;  %465 = vset.pattern.permute.xlu0 (!%p205_p2), %v481_v3  ;;  %p238_p3 = scmp.lt.s32.totalorder (!%p205_p2), %s518_s19, 1 }
   0x8   : > { %s261_s27 = scalar_lea.vmem (!%p205_p2), %s558_s0, %s441_s24  ;;  %v322_v15 = vshrl.u32 (!%p205_p2), %v319_v12, 7  ;;  %v320_v17 = vand.u32 (!%p205_p2), 127, %v319_v12 }
   0x9   : > { %v262_v2 = vld [vmem:[%s261_s27] sm:$0xf] (!%p205_p2) }
   0xa   : > { %v324_v18 = vadd.s32 (!%p205_p2), %v323_v16, %v322_v15 }
   0xc   : > { %vm325_vm2 = vcmp.ne.s32.totalorder (!%p205_p2), %v320_v17, %v324_v18 }
   0xd   : > { %s565_s19 = smov (!%p238_p3, %s518_s19), 1 }
   0xe   : > { %451 = vmatmul.mubr.bf16.vlgmr.msra.gmra.mrb[0].mxu0 %v262_v2  ;;  %s532_s28 = sshll.u32 %s565_s19, 3 }
   0xf   : > { %s241_s6 = scalar_lea.vmem %s559_s1, %s532_s28  ;;  %s245_s11 = scalar_lea.vmem %s561_s3, %s532_s28 }
  0x10   : > { %v263_v10 = vld [vmem:[%s241_s6] sm:$0xff]  ;;  %s249_s14 = scalar_lea.vmem %s562_s4, %s532_s28  ;;  %s253_s17 = scalar_lea.vmem %s563_s5, %s532_s28 }
  0x11   : > { %v265_v28 = vld [vmem:[%s245_s11] sm:$0xff] }
  0x12   : > { %v266_v31 = vld [vmem:[%s249_s14] sm:$0xff] }
  0xe1   : > { %v307_v4 = vpop.f32.mrb[0].mxu0 }
  0xe2   : > { %v313_v5 = vmul.f32 14.285714, %v307_v4  ;;  %v452_v6 = vpop.f32.mrb[1].mxu0 }
  0xe3   : > { %v310_v7 = vpop.f32.mrb[2].mxu0 }
  0xe4   : > { %v453_v8 = vpop.f32.mrb[3].mxu0  ;;  %v315_v9 = vsel %vm314_vm1, %v313_v5, -inf }
  0xe5   : > { %316 = vmax.xlane.f32.xlu0 %v315_v9 }
  0xfb   : > { %335 = vperm.xlu0 %465, %v263_v10  }
 0x172   : > { %v317_v11 = vpop.xlane.xlu0 %316 }
 0x173   : > { %v318_v13 = vsub.f32 %v313_v5, %v317_v11 }
 0x175   : > { %v326_v14 = vmul.f32 1.442695, %v318_v13 }
 0x177   : > { %467 = vpow2.f32 %v326_v14 }
 0x17a   : > { %v336_v20 = vpop.permute.xlu0 %335 }
 0x17b   : > { %vm341_vm3 = vcmp.eq.s32.totalorder %v336_v20, %v443_v19 }
 0x17c   : > { %vm342_vm4 = vmand %vm341_vm3, %vm325_vm2 }
 0x17d   : > { %v343_v24 = vsel %vm342_vm4, %v318_v13, 0.0 }
 0x17e   : > { %v344_v25 = vsel %vm314_vm1, %v343_v24, 0.0 }
 0x181   : > { %v468_v21 = vpop.eup %467 }
 0x182   : > { %v328_v22 = vsel %vm325_vm2, %v468_v21, 0.0 }
 0x183   : > { %v329_v23 = vsel %vm314_vm1, %v328_v22, 0.0 }
 0x184   : > { %330 = vadd.xlane.f32.xlu1 %v329_v23 }
 0x188   : > { %345 = vadd.xlane.f32.xlu1 %v344_v25 }
 0x211   : > { %v331_v26 = vpop.xlane.xlu1 %330 }
 0x212   : > { %469 = vlog2.f32 %v331_v26 }
 0x215   : > { %v346_v32 = vpop.xlane.xlu1 %345 }
 0x21c   : > { %v470_v27 = vpop.eup %469 }
 0x21d   : > { %v333_v29 = vmul.f32 0.6931472, %v470_v27 }
 0x21f   : > { %v347_v30 = vmul.f32 %v333_v29, %v265_v28 }
 0x221   : > { %v348_v33 = vsub.f32 %v346_v32, %v347_v30 }
 0x223   : > { %v349_v34 = vmul.f32 %v348_v33, %v266_v31 }
 0x225   : > { %351 = vst.msk [vmem:[%s253_s17] sm:$0xff] %vm350_vm5, %v349_v34 }
 0x226 PF: > { %s15_s18 = sadd.s32 1, %s477_s18  }
 0x227   : > { %p12_p4 = scmp.ge.s32.totalorder %s15_s18, 4  }
 0x229   :  { %14 = sbr.rel (!%p12_p4) target bundleno = 1 (0x1), region = 77 }

// kernel: tpu_custom_call.1
= control target key start
LH: loop header
LB: loop body
LE: loop exit
PB: predicated region body
PF: predicated region fallthrough
CT: control target
= control target key end

     0   :  { %s512_s18 = smov 0   ;;  %s558_s0 = inlined_call_operand.vmem [shape: bf16[16,128], index: 0, kind: input, shape index: {}]   ;;  %s559_s1 = inlined_call_operand.vmem [shape: s32[16,1], index: 1, kind: input, shape index: {}]   ;;  %s560_s2 = inlined_call_operand.vmem [shape: s32[1,16], index: 2, kind: input, shape index: {}]   ;;  %s561_s3 = inlined_call_operand.vmem [shape: f32[16,1], index: 3, kind: input, shape index: {}]   ;;  %s562_s4 = inlined_call_operand.vmem [shape: f32[16,1], index: 4, kind: input, shape index: {}]   ;;  %s563_s5 = inlined_call_operand.vmem [shape: f32[16,1], index: 5, kind: output, shape index: {}]  }
   0x1 LB: > { %s518_s19 = sadd.s32 4294967295, %s477_s18   ;;  %p435_p0 = scmp.ge.s32.totalorder %s477_s18, 1  ;;  %s477_s18 = sphi %s512_s18, %s15_s18  }
   0x2   : > { %p204_p1 = scmp.lt.s32.totalorder %s477_s18, 3 }
   0x4   : > { %p205_p2 = pnand %p435_p0, %p204_p1 }
   0x5   : > { %v466_v0 = vld [vmem:[%s558_s0] sm:$0xff] (!%p205_p2)   ;;  %v479_v1 = vmov (!%p205_p2), 0.0   ;;  %s440_s22 = sshll.u32 (!%p205_p2), %s518_s19, 3  ;;  %vm480_vm0 = vmmov (!%p205_p2), 0   ;;  %v481_v3 = vmov (!%p205_p2), 0   ;;  %vm314_vm1 = vcmask (!%p205_p2), 130048  }
   0x6   : > { %208 = sbr.rel (%p205_p2) target bundleno = 550 (0x226), region = 40  ;;  %448 = vmatprep.subr.bf16.mxu0 (!%p205_p2), %v479_v1  ;;  %450 = vmatprep.mubr.msk.bf16.mxu0 (!%p205_p2), %vm480_vm0, %v479_v1  ;;  %s258_s23 = sshra.s32 (!%p205_p2), %s440_s22, 3  ;;  %v319_v12 = vlaneseq (!%p205_p2)  ;;  %v323_v16 = vstv (!%p205_p2), %s440_s22  ;;  %v443_v19 = vld [vmem:[%s560_s2] ss:$0 sm:$0xff] (!%p205_p2)  ;;  %vm350_vm5 = vcmask (!%p205_p2), 7168  }
   0x7   : > { %449 = vmatpush3.bf16.xpose.msra.mxu0 (!%p205_p2), %v466_v0  ;;  %s441_s24 = sshll.u32 (!%p205_p2), %s258_s23, 2  ;;  %465 = vset.pattern.permute.xlu0 (!%p205_p2), %v481_v3  ;;  %p238_p3 = scmp.lt.s32.totalorder (!%p205_p2), %s518_s19, 1 }
   0x8   : > { %s261_s27 = scalar_lea.vmem (!%p205_p2), %s558_s0, %s441_s24  ;;  %v322_v15 = vshrl.u32 (!%p205_p2), %v319_v12, 7  ;;  %v320_v17 = vand.u32 (!%p205_p2), 127, %v319_v12 }
   0x9   : > { %v262_v2 = vld [vmem:[%s261_s27] sm:$0xf] (!%p205_p2) }
   0xa   : > { %v324_v18 = vadd.s32 (!%p205_p2), %v323_v16, %v322_v15 }
   0xc   : > { %vm325_vm2 = vcmp.ne.s32.totalorder (!%p205_p2), %v320_v17, %v324_v18 }
   0xd   : > { %s565_s19 = smov (!%p238_p3, %s518_s19), 1 }
   0xe   : > { %451 = vmatmul.mubr.bf16.vlgmr.msra.gmra.mrb[0].mxu0 %v262_v2  ;;  %s532_s28 = sshll.u32 %s565_s19, 3 }
   0xf   : > { %s241_s6 = scalar_lea.vmem %s559_s1, %s532_s28  ;;  %s245_s11 = scalar_lea.vmem %s561_s3, %s532_s28 }
  0x10   : > { %v263_v10 = vld [vmem:[%s241_s6] sm:$0xff]  ;;  %s249_s14 = scalar_lea.vmem %s562_s4, %s532_s28  ;;  %s253_s17 = scalar_lea.vmem %s563_s5, %s532_s28 }
  0x11   : > { %v265_v28 = vld [vmem:[%s245_s11] sm:$0xff] }
  0x12   : > { %v266_v31 = vld [vmem:[%s249_s14] sm:$0xff] }
  0xe1   : > { %v307_v4 = vpop.f32.mrb[0].mxu0 }
  0xe2   : > { %v313_v5 = vmul.f32 14.285714, %v307_v4  ;;  %v452_v6 = vpop.f32.mrb[1].mxu0 }
  0xe3   : > { %v310_v7 = vpop.f32.mrb[2].mxu0 }
  0xe4   : > { %v453_v8 = vpop.f32.mrb[3].mxu0  ;;  %v315_v9 = vsel %vm314_vm1, %v313_v5, -inf }
  0xe5   : > { %316 = vmax.xlane.f32.xlu0 %v315_v9 }
  0xfb   : > { %335 = vperm.xlu0 %465, %v263_v10  }
 0x172   : > { %v317_v11 = vpop.xlane.xlu0 %316 }
 0x173   : > { %v318_v13 = vsub.f32 %v313_v5, %v317_v11 }
 0x175   : > { %v326_v14 = vmul.f32 1.442695, %v318_v13 }
 0x177   : > { %467 = vpow2.f32 %v326_v14 }
 0x17a   : > { %v336_v20 = vpop.permute.xlu0 %335 }
 0x17b   : > { %vm341_vm3 = vcmp.eq.s32.totalorder %v336_v20, %v443_v19 }
 0x17c   : > { %vm342_vm4 = vmand %vm341_vm3, %vm325_vm2 }
 0x17d   : > { %v343_v24 = vsel %vm342_vm4, %v318_v13, 0.0 }
 0x17e   : > { %v344_v25 = vsel %vm314_vm1, %v343_v24, 0.0 }
 0x181   : > { %v468_v21 = vpop.eup %467 }
 0x182   : > { %v328_v22 = vsel %vm325_vm2, %v468_v21, 0.0 }
 0x183   : > { %v329_v23 = vsel %vm314_vm1, %v328_v22, 0.0 }
 0x184   : > { %330 = vadd.xlane.f32.xlu1 %v329_v23 }
 0x188   : > { %345 = vadd.xlane.f32.xlu1 %v344_v25 }
 0x211   : > { %v331_v26 = vpop.xlane.xlu1 %330 }
 0x212   : > { %469 = vlog2.f32 %v331_v26 }
 0x215   : > { %v346_v32 = vpop.xlane.xlu1 %345 }
 0x21c   : > { %v470_v27 = vpop.eup %469 }
 0x21d   : > { %v333_v29 = vmul.f32 0.6931472, %v470_v27 }
 0x21f   : > { %v347_v30 = vmul.f32 %v333_v29, %v265_v28 }
 0x221   : > { %v348_v33 = vsub.f32 %v346_v32, %v347_v30 }
 0x223   : > { %v349_v34 = vmul.f32 %v348_v33, %v266_v31 }
 0x225   : > { %351 = vst.msk [vmem:[%s253_s17] sm:$0xff] %vm350_vm5, %v349_v34 }
 0x226 PF: > { %s15_s18 = sadd.s32 1, %s477_s18  }
 0x227   : > { %p12_p4 = scmp.ge.s32.totalorder %s15_s18, 4  }
 0x229   :  { %14 = sbr.rel (!%p12_p4) target bundleno = 1 (0x1), region = 77 }

</bundles_post_ra>
